<compile_context>
chip_gen: v6e
topology: v6e:2x2x1
jax: 0.10.0
libtpu: 0.0.40
codegen_flags: <defaults>
</compile_context>

<pallas_src>
import functools

import jax
import jax.numpy as jnp
from jax import lax
from jax.experimental import pallas as pl
from jax.experimental.pallas import tpu as pltpu

_SUBLANE = 8


def _round_up(x, m):
    return ((x + m - 1) // m) * m


def _pad_axis(x, target, axis):
    pad = target - x.shape[axis]
    if pad == 0:
        return x
    cfg = [(0, 0)] * x.ndim
    cfg[axis] = (0, pad)
    return jnp.pad(x, cfg)


def _pick_row_tile(m):
    # m is always a multiple of 8 by construction.
    for t in (512, 256, 128, 64, 32, 16, 8):
        if m % t == 0:
            return t
    return m


def _pick_seq_tile(s, row_elems, budget_bytes=2 << 20):
    """Largest tile in {512..8} dividing round_up(s, 8) whose per-block VMEM
    footprint (row_elems f32 words per row) stays under `budget_bytes`."""
    sp = _round_up(s, _SUBLANE)
    for t in (512, 256, 128, 64, 32, 16, 8):
        if sp % t == 0 and t * row_elems * 4 <= budget_bytes:
            return t
    return _SUBLANE


# --------------------------------------------------------------------------
# Fused small-problem kernel: projections + attention in one pallas_call.
# --------------------------------------------------------------------------
def _fused_kernel(q_ref, k_ref, v_ref, wq_ref, bq_ref, wk_ref, bk_ref,
                  wv_ref, bv_ref, o_ref, *, scale):
    f32 = jnp.float32
    cdt = q_ref.dtype
    # Projections: MXU inputs in compute dtype, f32 accumulation, f32 bias add.
    q = (jnp.dot(q_ref[0], wq_ref[...], preferred_element_type=f32)
         + bq_ref[...]) * scale
    k = jnp.dot(k_ref[0], wk_ref[...], preferred_element_type=f32) + bk_ref[...]
    v = jnp.dot(v_ref[0], wv_ref[...], preferred_element_type=f32) + bv_ref[...]
    q = q.astype(cdt)
    k = k.astype(cdt)
    v = v.astype(cdt)
    # QK^T via last-dim/last-dim contraction: no explicit transpose.
    s = lax.dot_general(q, k, (((1,), (1,)), ((), ())),
                        preferred_element_type=f32)          # (Sq, Sk)
    m = jnp.max(s, axis=-1, keepdims=True)
    p = jnp.exp(s - m)
    l = jnp.sum(p, axis=-1, keepdims=True)
    acc = jnp.dot(p.astype(cdt), v, preferred_element_type=f32)
    o_ref[0] = (acc * pl.reciprocal(l, approx=False)).astype(o_ref.dtype)


def _fused_cross_attention(q, k, v, wq, bq, wk, bk, wv, bv, *, scale, out_dtype):
    B, Sq, Dm = q.shape
    _, Sk, _ = k.shape
    Qd, Kd, Vd = wq.shape[1], wk.shape[1], wv.shape[1]
    const = lambda b: (0, 0)
    return pl.pallas_call(
        functools.partial(_fused_kernel, scale=scale),
        out_shape=jax.ShapeDtypeStruct((B, Sq, Vd), out_dtype),
        grid_spec=pltpu.PrefetchScalarGridSpec(
            num_scalar_prefetch=0,
            grid=(B,),
            in_specs=[
                pl.BlockSpec((1, Sq, Dm), lambda b: (b, 0, 0)),
                pl.BlockSpec((1, Sk, Dm), lambda b: (b, 0, 0)),
                pl.BlockSpec((1, Sk, Dm), lambda b: (b, 0, 0)),
                pl.BlockSpec((Dm, Qd), const), pl.BlockSpec((1, Qd), const),
                pl.BlockSpec((Dm, Kd), const), pl.BlockSpec((1, Kd), const),
                pl.BlockSpec((Dm, Vd), const), pl.BlockSpec((1, Vd), const),
            ],
            out_specs=pl.BlockSpec((1, Sq, Vd), lambda b: (b, 0, 0)),
        ),
        compiler_params=pltpu.CompilerParams(
            dimension_semantics=("parallel",)),
    )(q, k, v, wq, bq, wk, bk, wv, bv)


# --------------------------------------------------------------------------
# Linear projection kernel (K/V projections on the general path).
# --------------------------------------------------------------------------
def _linear_kernel(x_ref, w_ref, b_ref, o_ref):
    acc = jnp.dot(x_ref[...], w_ref[...], preferred_element_type=jnp.float32)
    o_ref[...] = (acc + b_ref[...]).astype(o_ref.dtype)


def _linear(x2d, w, b2d, *, out_dtype):
    M, Dp = x2d.shape
    Np = w.shape[1]
    tile_m = _pick_row_tile(M)
    return pl.pallas_call(
        _linear_kernel,
        out_shape=jax.ShapeDtypeStruct((M, Np), out_dtype),
        grid_spec=pltpu.PrefetchScalarGridSpec(
            num_scalar_prefetch=0,
            grid=(M // tile_m,),
            in_specs=[
                pl.BlockSpec((tile_m, Dp), lambda i: (i, 0)),   # activations
                pl.BlockSpec((Dp, Np), lambda i: (0, 0)),       # weight (constant)
                pl.BlockSpec((1, Np), lambda i: (0, 0)),        # bias   (constant)
            ],
            out_specs=pl.BlockSpec((tile_m, Np), lambda i: (i, 0)),
        ),
        compiler_params=pltpu.CompilerParams(
            dimension_semantics=("parallel",)),
    )(x2d, w, b2d)


# --------------------------------------------------------------------------
# Flash-style attention with the Q projection fused into the kernel.
# --------------------------------------------------------------------------
def _flash_attn_kernel(q_ref, wq_ref, bq_ref, k_ref, v_ref, o_ref,
                       q_sc, m_sc, l_sc, acc_sc, *,
                       scale, sk_actual, tk, need_mask):
    ki = pl.program_id(2)

    @pl.when(ki == 0)
    def _init():
        # Project the raw query tile once per (b, q-tile); reused for all ki.
        qp = jnp.dot(q_ref[0], wq_ref[...], preferred_element_type=jnp.float32)
        q_sc[...] = ((qp + bq_ref[...]) * scale).astype(q_sc.dtype)
        m_sc[...] = jnp.full(m_sc.shape, -jnp.inf, m_sc.dtype)
        l_sc[...] = jnp.zeros(l_sc.shape, l_sc.dtype)
        acc_sc[...] = jnp.zeros(acc_sc.shape, acc_sc.dtype)

    k = k_ref[0]            # (tk, Kd)
    v = v_ref[0]            # (tk, Vd)

    # Contraction on the last dim of both operands: no K transpose materialized.
    s = lax.dot_general(q_sc[...], k, (((1,), (1,)), ((), ())),
                        preferred_element_type=jnp.float32)      # (tq, tk)

    if need_mask:
        # Only present when Sk % 8 != 0 (the last tile carries <8 padded rows);
        # for aligned sequences this code does not exist at all.
        kidx = ki * tk + lax.broadcasted_iota(jnp.int32, s.shape, 1)
        s = jnp.where(kidx < sk_actual, s, -1e30)

    m_prev = m_sc[...]
    m_new = jnp.maximum(m_prev, jnp.max(s, axis=-1, keepdims=True))
    alpha = jnp.exp(m_prev - m_new)
    p = jnp.exp(s - m_new)
    l_sc[...] = alpha * l_sc[...] + jnp.sum(p, axis=-1, keepdims=True)
    acc_sc[...] = alpha * acc_sc[...] + jnp.dot(
        p.astype(v.dtype), v, preferred_element_type=jnp.float32)
    m_sc[...] = m_new

    @pl.when(ki == pl.num_programs(2) - 1)
    def _finalize():
        inv = pl.reciprocal(l_sc[...], approx=False)
        o_ref[0] = (acc_sc[...] * inv).astype(o_ref.dtype)


def _flash_attention(q_raw, wq, bq2, k_proj, v_proj, out_dtype, *,
                     scale, sk_actual, tq, tk, cdt):
    B, Sqp, Dm = q_raw.shape
    _, Skp, Kd = k_proj.shape
    Vd = v_proj.shape[-1]
    Qd = wq.shape[1]
    need_mask = Skp != sk_actual
    kern = functools.partial(_flash_attn_kernel, scale=scale,
                             sk_actual=sk_actual, tk=tk, need_mask=need_mask)
    return pl.pallas_call(
        kern,
        out_shape=jax.ShapeDtypeStruct((B, Sqp, Vd), out_dtype),
        grid_spec=pltpu.PrefetchScalarGridSpec(
            num_scalar_prefetch=0,
            grid=(B, Sqp // tq, Skp // tk),
            in_specs=[
                pl.BlockSpec((1, tq, Dm), lambda b, qi, ki: (b, qi, 0)),  # raw query
                pl.BlockSpec((Dm, Qd), lambda b, qi, ki: (0, 0)),         # Wq (const)
                pl.BlockSpec((1, Qd), lambda b, qi, ki: (0, 0)),          # bq (const)
                pl.BlockSpec((1, tk, Kd), lambda b, qi, ki: (b, ki, 0)),  # K proj
                pl.BlockSpec((1, tk, Vd), lambda b, qi, ki: (b, ki, 0)),  # V proj
            ],
            out_specs=pl.BlockSpec((1, tq, Vd), lambda b, qi, ki: (b, qi, 0)),
            scratch_shapes=[
                pltpu.VMEM((tq, Qd), cdt),            # projected, pre-scaled Q
                pltpu.VMEM((tq, 1), jnp.float32),     # running max  m
                pltpu.VMEM((tq, 1), jnp.float32),     # running sum  l
                pltpu.VMEM((tq, Vd), jnp.float32),    # accumulator
            ],
        ),
        compiler_params=pltpu.CompilerParams(
            dimension_semantics=("parallel", "parallel", "arbitrary")),
    )(q_raw, wq, bq2, k_proj, v_proj)


# --------------------------------------------------------------------------
# Public wrapper
# --------------------------------------------------------------------------
def _fused_fits(Sq, Sk, Dm, Qd, Kd, Vd, itemsize, budget=8 << 20):
    streamed = 2 * itemsize * (Sq * Dm + 2 * Sk * Dm + Dm * (Qd + Kd + Vd)
                               + (Qd + Kd + Vd) + Sq * Vd)
    temps = 4 * (Sq * Qd + Sk * Kd + Sk * Vd + Sq * Sk + Sq * Vd)
    return (streamed + temps) <= budget


def cross_attention(query, key, value, params, *, compute_dtype=None,
                    use_fused=None):
    """query: (B, Sq, Dm); key/value: (B, Sk, Dm). Returns (B, Sq, V_dim).

    Weights in `params` are pre-transposed to (in_dim, out_dim) so the kernels
    compute x @ W + b (== PyTorch's x @ W.T + b with W=[out, in]).
    compute_dtype: optional MXU input dtype (jnp.bfloat16 recommended on
    v5e/v6e/v7x); accumulation and softmax stay in f32. Default keeps the
    input dtype so the module's f32 semantics are exact.
    """
    wq, bq, wk, bk, wv, bv = params
    B, Sq, Dm = query.shape
    _, Sk, _ = key.shape
    Qd, Kd, Vd = wq.shape[1], wk.shape[1], wv.shape[1]
    assert Qd == Kd, "Q_dim must equal K_dim for Q @ K^T"

    out_dtype = query.dtype
    cdt = compute_dtype or query.dtype
    scale = 1.0 / (float(Kd) ** 0.5)      # folded into the Q projection

    # Biases stay f32 (added onto the f32 accumulator); weights in the MXU
    # input dtype.  With the default cdt these casts are no-ops.
    bq2 = bq.reshape(1, Qd).astype(jnp.float32)
    bk2 = bk.reshape(1, Kd).astype(jnp.float32)
    bv2 = bv.reshape(1, Vd).astype(jnp.float32)
    wq_c, wk_c, wv_c = wq.astype(cdt), wk.astype(cdt), wv.astype(cdt)

    if use_fused is None:
        use_fused = _fused_fits(Sq, Sk, Dm, Qd, Kd, Vd, jnp.dtype(cdt).itemsize)

    if use_fused:
        # Single launch, weights resident in VMEM, no padding / masking needed.
        return _fused_cross_attention(
            query.astype(cdt), key.astype(cdt), value.astype(cdt),
            wq_c, bq2, wk_c, bk2, wv_c, bv2, scale=scale, out_dtype=out_dtype)

    # ---- general flash path -------------------------------------------------
    itemsize = jnp.dtype(cdt).itemsize
    tq = _pick_seq_tile(Sq, Dm + Qd + 2 * Vd)
    tk = _pick_seq_tile(Sk, 2 * (Kd + Vd))
    Sqp = _round_up(Sq, tq)       # == round_up(Sq, 8): <8 rows of padding
    Skp = _round_up(Sk, tk)

    q_pad = _pad_axis(query, Sqp, 1).astype(cdt)
    k_pad = _pad_axis(key, Skp, 1).astype(cdt)
    v_pad = _pad_axis(value, Skp, 1).astype(cdt)

    # K / V projections over flattened rows (lane dims left unpadded).
    Kp = _linear(k_pad.reshape(B * Skp, Dm), wk_c, bk2,
                 out_dtype=cdt).reshape(B, Skp, Kd)
    Vp = _linear(v_pad.reshape(B * Skp, Dm), wv_c, bv2,
                 out_dtype=cdt).reshape(B, Skp, Vd)

    out_p = _flash_attention(q_pad, wq_c, bq2, Kp, Vp, out_dtype,
                             scale=scale, sk_actual=Sk, tq=tq, tk=tk, cdt=cdt)
    return out_p[:, :Sq, :]


def init_params(key, model_dim, Q_dim, K_dim, V_dim, dtype=jnp.float32):
    """Deterministic init mimicking nn.Linear's uniform(-1/sqrt(in), 1/sqrt(in)).
    Weights are returned already transposed to (in_dim, out_dim)."""
    ks = jax.random.split(key, 6)
    bound = 1.0 / (model_dim ** 0.5)
    u = lambda k, shape: jax.random.uniform(k, shape, dtype, -bound, bound)
    wq = u(ks[0], (model_dim, Q_dim)); bq = u(ks[1], (Q_dim,))
    wk = u(ks[2], (model_dim, K_dim)); bk = u(ks[3], (K_dim,))
    wv = u(ks[4], (model_dim, V_dim)); bv = u(ks[5], (V_dim,))
    return (wq, bq, wk, bk, wv, bv)


def cross_attention_ref(query, key, value, params):
    """Pure-JAX reference identical to the PyTorch forward."""
    wq, bq, wk, bk, wv, bv = params
    Q = query @ wq + bq
    K = key @ wk + bk
    V = value @ wv + bv
    score = jnp.einsum("bqd,bkd->bqk", Q, K) / (K.shape[-1] ** 0.5)
    attn = jax.nn.softmax(score, axis=-1)
    return jnp.einsum("bqk,bkv->bqv", attn, V)


if __name__ == "__main__":
    # --- Case 1: small shapes consistent with the module's forward (fused path)
    B, Sq, Sk = 2, 8, 8
    model_dim, Q_dim, K_dim, V_dim = 32, 16, 16, 32

    root = jax.random.PRNGKey(0)
    k_params, k_q, k_k, k_v, k2_params, k2_q, k2_k, k2_v = jax.random.split(root, 8)

    params = init_params(k_params, model_dim, Q_dim, K_dim, V_dim)
    query = jax.random.normal(k_q, (B, Sq, model_dim), jnp.float32)
    key = jax.random.normal(k_k, (B, Sk, model_dim), jnp.float32)
    value = jax.random.normal(k_v, (B, Sk, model_dim), jnp.float32)

    out = jax.block_until_ready(cross_attention(query, key, value, params))
    ref = cross_attention_ref(query, key, value, params)
    assert out.shape == (B, Sq, V_dim), out.shape
    assert jnp.allclose(out, ref, atol=1e-5, rtol=1e-5), "fused path mismatch"

    # --- Case 2: ragged sequence lengths, general flash path, f32
    B2, Sq2, Sk2 = 2, 40, 21
    md2, qd2, kd2, vd2 = 48, 24, 24, 40
    params2 = init_params(k2_params, md2, qd2, kd2, vd2)
    query2 = jax.random.normal(k2_q, (B2, Sq2, md2), jnp.float32)
    key2 = jax.random.normal(k2_k, (B2, Sk2, md2), jnp.float32)
    value2 = jax.random.normal(k2_v, (B2, Sk2, md2), jnp.float32)

    out2 = jax.block_until_ready(
        cross_attention(query2, key2, value2, params2, use_fused=False))
    ref2 = cross_attention_ref(query2, key2, value2, params2)
    assert out2.shape == (B2, Sq2, vd2), out2.shape
    assert jnp.allclose(out2, ref2, atol=2e-5, rtol=2e-5), "flash path mismatch"

    # --- Case 3: same problem with bf16 MXU inputs (review-recommended mode)
    out3 = jax.block_until_ready(
        cross_attention(query2, key2, value2, params2,
                        compute_dtype=jnp.bfloat16, use_fused=False))
    assert out3.shape == (B2, Sq2, vd2), out3.shape
    assert jnp.allclose(out3, ref2, atol=5e-2, rtol=5e-2), "bf16 path mismatch"

    print("KERNEL_OK")
</pallas_src>

<mosaic_0001>
module attributes {stable_mosaic.version = 11 : i64} {
  func.func @_fused_kernel(%arg0: i32, %arg1: memref<1x8x32xf32, #tpu.memory_space<vmem>>, %arg2: memref<1x8x32xf32, #tpu.memory_space<vmem>>, %arg3: memref<1x8x32xf32, #tpu.memory_space<vmem>>, %arg4: memref<32x16xf32, #tpu.memory_space<vmem>>, %arg5: memref<1x16xf32, #tpu.memory_space<vmem>>, %arg6: memref<32x16xf32, #tpu.memory_space<vmem>>, %arg7: memref<1x16xf32, #tpu.memory_space<vmem>>, %arg8: memref<32x32xf32, #tpu.memory_space<vmem>>, %arg9: memref<1x32xf32, #tpu.memory_space<vmem>>, %arg10: memref<1x8x32xf32, #tpu.memory_space<vmem>>) attributes {dimension_semantics = [#tpu.dimension_semantics<parallel>], iteration_bounds = array<i64: 2>, scalar_prefetch = 0 : i64, scratch_operands = 0 : i64, tpu.core_type = #tpu.core_type<tc>, window_params = [{transform_indices = @transform_0, window_bounds = array<i64: 1, 8, 32>}, {transform_indices = @transform_1, window_bounds = array<i64: 1, 8, 32>}, {transform_indices = @transform_2, window_bounds = array<i64: 1, 8, 32>}, {pipeline_mode = #tpu.pipeline_mode<synchronous>, transform_indices = @transform_3, window_bounds = array<i64: 32, 16>}, {pipeline_mode = #tpu.pipeline_mode<synchronous>, transform_indices = @transform_4, window_bounds = array<i64: 1, 16>}, {pipeline_mode = #tpu.pipeline_mode<synchronous>, transform_indices = @transform_5, window_bounds = array<i64: 32, 16>}, {pipeline_mode = #tpu.pipeline_mode<synchronous>, transform_indices = @transform_6, window_bounds = array<i64: 1, 16>}, {pipeline_mode = #tpu.pipeline_mode<synchronous>, transform_indices = @transform_7, window_bounds = array<i64: 32, 32>}, {pipeline_mode = #tpu.pipeline_mode<synchronous>, transform_indices = @transform_8, window_bounds = array<i64: 1, 32>}, {transform_indices = @transform_9, window_bounds = array<i64: 1, 8, 32>}]} {
    %c0 = arith.constant 0 : index
    %c0_0 = arith.constant 0 : index
    %c0_1 = arith.constant 0 : index
    %0 = vector.load %arg1[%c0, %c0_0, %c0_1] : memref<1x8x32xf32, #tpu.memory_space<vmem>>, vector<1x8x32xf32>
    %1 = vector.shape_cast %0 : vector<1x8x32xf32> to vector<8x32xf32>
    %c0_2 = arith.constant 0 : index
    %c0_3 = arith.constant 0 : index
    %2 = vector.load %arg4[%c0_2, %c0_3] : memref<32x16xf32, #tpu.memory_space<vmem>>, vector<32x16xf32>
    %cst = arith.constant dense<0.000000e+00> : vector<8x16xf32>
    %3 = tpu.matmul %1, %2, %cst {dimension_numbers = #tpu.dot_dimension_numbers<[1], [0], [0], [1], [0, 0, 1, 1], [], []>} : vector<8x32xf32>, vector<32x16xf32>, vector<8x16xf32> -> vector<8x16xf32>
    %c0_4 = arith.constant 0 : index
    %c0_5 = arith.constant 0 : index
    %4 = vector.load %arg5[%c0_4, %c0_5] : memref<1x16xf32, #tpu.memory_space<vmem>>, vector<1x16xf32>
    %5 = vector.broadcast %4 : vector<1x16xf32> to vector<8x16xf32>
    %6 = arith.addf %3, %5 : vector<8x16xf32>
    %cst_6 = arith.constant 2.500000e-01 : f32
    %7 = vector.broadcast %cst_6 : f32 to vector<8x16xf32>
    %8 = arith.mulf %6, %7 : vector<8x16xf32>
    %c0_7 = arith.constant 0 : index
    %c0_8 = arith.constant 0 : index
    %c0_9 = arith.constant 0 : index
    %9 = vector.load %arg2[%c0_7, %c0_8, %c0_9] : memref<1x8x32xf32, #tpu.memory_space<vmem>>, vector<1x8x32xf32>
    %10 = vector.shape_cast %9 : vector<1x8x32xf32> to vector<8x32xf32>
    %c0_10 = arith.constant 0 : index
    %c0_11 = arith.constant 0 : index
    %11 = vector.load %arg6[%c0_10, %c0_11] : memref<32x16xf32, #tpu.memory_space<vmem>>, vector<32x16xf32>
    %cst_12 = arith.constant dense<0.000000e+00> : vector<8x16xf32>
    %12 = tpu.matmul %10, %11, %cst_12 {dimension_numbers = #tpu.dot_dimension_numbers<[1], [0], [0], [1], [0, 0, 1, 1], [], []>} : vector<8x32xf32>, vector<32x16xf32>, vector<8x16xf32> -> vector<8x16xf32>
    %c0_13 = arith.constant 0 : index
    %c0_14 = arith.constant 0 : index
    %13 = vector.load %arg7[%c0_13, %c0_14] : memref<1x16xf32, #tpu.memory_space<vmem>>, vector<1x16xf32>
    %14 = vector.broadcast %13 : vector<1x16xf32> to vector<8x16xf32>
    %15 = arith.addf %12, %14 : vector<8x16xf32>
    %c0_15 = arith.constant 0 : index
    %c0_16 = arith.constant 0 : index
    %c0_17 = arith.constant 0 : index
    %16 = vector.load %arg3[%c0_15, %c0_16, %c0_17] : memref<1x8x32xf32, #tpu.memory_space<vmem>>, vector<1x8x32xf32>
    %17 = vector.shape_cast %16 : vector<1x8x32xf32> to vector<8x32xf32>
    %c0_18 = arith.constant 0 : index
    %c0_19 = arith.constant 0 : index
    %18 = vector.load %arg8[%c0_18, %c0_19] : memref<32x32xf32, #tpu.memory_space<vmem>>, vector<32x32xf32>
    %cst_20 = arith.constant dense<0.000000e+00> : vector<8x32xf32>
    %19 = tpu.matmul %17, %18, %cst_20 {dimension_numbers = #tpu.dot_dimension_numbers<[1], [0], [0], [1], [0, 0, 1, 1], [], []>} : vector<8x32xf32>, vector<32x32xf32>, vector<8x32xf32> -> vector<8x32xf32>
    %c0_21 = arith.constant 0 : index
    %c0_22 = arith.constant 0 : index
    %20 = vector.load %arg9[%c0_21, %c0_22] : memref<1x32xf32, #tpu.memory_space<vmem>>, vector<1x32xf32>
    %21 = vector.broadcast %20 : vector<1x32xf32> to vector<8x32xf32>
    %22 = arith.addf %19, %21 : vector<8x32xf32>
    %cst_23 = arith.constant dense<0.000000e+00> : vector<8x8xf32>
    %23 = tpu.matmul %8, %15, %cst_23 {dimension_numbers = #tpu.dot_dimension_numbers<[1], [1], [0], [0], [0, 0, 1, 0], [], []>} : vector<8x16xf32>, vector<8x16xf32>, vector<8x8xf32> -> vector<8x8xf32>
    %cst_24 = arith.constant dense<0xFF800000> : vector<8xf32>
    %24 = vector.multi_reduction <maximumf>, %23, %cst_24 [1] : vector<8x8xf32> to vector<8xf32>
    %25 = vector.shape_cast %24 : vector<8xf32> to vector<8x1xf32>
    %26 = vector.broadcast %25 : vector<8x1xf32> to vector<8x8xf32>
    %27 = arith.subf %23, %26 : vector<8x8xf32>
    %28 = math.exp %27 : vector<8x8xf32>
    %cst_25 = arith.constant dense<0.000000e+00> : vector<8xf32>
    %29 = vector.multi_reduction <add>, %28, %cst_25 [1] : vector<8x8xf32> to vector<8xf32>
    %30 = vector.shape_cast %29 : vector<8xf32> to vector<8x1xf32>
    %cst_26 = arith.constant dense<0.000000e+00> : vector<8x32xf32>
    %31 = tpu.matmul %28, %22, %cst_26 {dimension_numbers = #tpu.dot_dimension_numbers<[1], [0], [0], [1], [0, 0, 1, 1], [], []>} : vector<8x8xf32>, vector<8x32xf32>, vector<8x32xf32> -> vector<8x32xf32>
    %32 = tpu.reciprocal %30 : vector<8x1xf32> -> vector<8x1xf32>
    %33 = vector.broadcast %32 : vector<8x1xf32> to vector<8x32xf32>
    %34 = arith.mulf %31, %33 : vector<8x32xf32>
    %c0_27 = arith.constant 0 : index
    %c0_28 = arith.constant 0 : index
    %c0_29 = arith.constant 0 : index
    %35 = vector.load %arg10[%c0_27, %c0_28, %c0_29] : memref<1x8x32xf32, #tpu.memory_space<vmem>>, vector<1x8x32xf32>
    %36 = vector.shape_cast %35 : vector<1x8x32xf32> to vector<8x32xf32>
    %37 = vector.shape_cast %34 : vector<8x32xf32> to vector<1x8x32xf32>
    tpu.vector_store %arg10[%c0_27, %c0_28, %c0_29], %37 {strides = array<i32>} : memref<1x8x32xf32, #tpu.memory_space<vmem>>, vector<1x8x32xf32>,
    return
  }
  func.func @transform_0(%arg0: i32) -> (i32, i32, i32) {
    %c0_i32 = arith.constant 0 : i32
    %c0_i32_0 = arith.constant 0 : i32
    %c0_i32_1 = arith.constant 0 : i32
    return %arg0, %c0_i32, %c0_i32_0 : i32, i32, i32
  }
  func.func @transform_1(%arg0: i32) -> (i32, i32, i32) {
    %c0_i32 = arith.constant 0 : i32
    %c0_i32_0 = arith.constant 0 : i32
    %c0_i32_1 = arith.constant 0 : i32
    return %arg0, %c0_i32, %c0_i32_0 : i32, i32, i32
  }
  func.func @transform_2(%arg0: i32) -> (i32, i32, i32) {
    %c0_i32 = arith.constant 0 : i32
    %c0_i32_0 = arith.constant 0 : i32
    %c0_i32_1 = arith.constant 0 : i32
    return %arg0, %c0_i32, %c0_i32_0 : i32, i32, i32
  }
  func.func @transform_3(%arg0: i32) -> (i32, i32) {
    %c0_i32 = arith.constant 0 : i32
    %c0_i32_0 = arith.constant 0 : i32
    %c0_i32_1 = arith.constant 0 : i32
    return %c0_i32, %c0_i32_0 : i32, i32
  }
  func.func @transform_4(%arg0: i32) -> (i32, i32) {
    %c0_i32 = arith.constant 0 : i32
    %c0_i32_0 = arith.constant 0 : i32
    %c0_i32_1 = arith.constant 0 : i32
    return %c0_i32, %c0_i32_0 : i32, i32
  }
  func.func @transform_5(%arg0: i32) -> (i32, i32) {
    %c0_i32 = arith.constant 0 : i32
    %c0_i32_0 = arith.constant 0 : i32
    %c0_i32_1 = arith.constant 0 : i32
    return %c0_i32, %c0_i32_0 : i32, i32
  }
  func.func @transform_6(%arg0: i32) -> (i32, i32) {
    %c0_i32 = arith.constant 0 : i32
    %c0_i32_0 = arith.constant 0 : i32
    %c0_i32_1 = arith.constant 0 : i32
    return %c0_i32, %c0_i32_0 : i32, i32
  }
  func.func @transform_7(%arg0: i32) -> (i32, i32) {
    %c0_i32 = arith.constant 0 : i32
    %c0_i32_0 = arith.constant 0 : i32
    %c0_i32_1 = arith.constant 0 : i32
    return %c0_i32, %c0_i32_0 : i32, i32
  }
  func.func @transform_8(%arg0: i32) -> (i32, i32) {
    %c0_i32 = arith.constant 0 : i32
    %c0_i32_0 = arith.constant 0 : i32
    %c0_i32_1 = arith.constant 0 : i32
    return %c0_i32, %c0_i32_0 : i32, i32
  }
  func.func @transform_9(%arg0: i32) -> (i32, i32, i32) {
    %c0_i32 = arith.constant 0 : i32
    %c0_i32_0 = arith.constant 0 : i32
    %c0_i32_1 = arith.constant 0 : i32
    return %arg0, %c0_i32, %c0_i32_0 : i32, i32, i32
  }
}

</mosaic_0001>

<bundles_post_ra>
// kernel: tpu_custom_call.1
= control target key start
LH: loop header
LB: loop body
LE: loop exit
PB: predicated region body
PF: predicated region fallthrough
CT: control target
= control target key end

     0   :  { %14 = vsyncpa [#allocation3], 0  ;;  %s1302_s0 = inlined_call_operand.vmem [shape: f32[2,8,32], index: 0, kind: input, shape index: {}]   ;;  %s1303_s1 = inlined_call_operand.vmem [shape: f32[2,8,32], index: 1, kind: input, shape index: {}]   ;;  %s1304_s2 = inlined_call_operand.vmem [shape: f32[2,8,32], index: 2, kind: input, shape index: {}]   ;;  %s1305_s3 = inlined_call_operand.vmem [shape: f32[32,16], index: 3, kind: input, shape index: {}]   ;;  %s1306_s4 = inlined_call_operand.vmem [shape: f32[1,16], index: 4, kind: input, shape index: {}]   ;;  %s1307_s5 = inlined_call_operand.vmem [shape: f32[32,16], index: 5, kind: input, shape index: {}]   ;;  %s1308_s6 = inlined_call_operand.vmem [shape: f32[1,16], index: 6, kind: input, shape index: {}]   ;;  %s1309_s7 = inlined_call_operand.vmem [shape: f32[32,32], index: 7, kind: input, shape index: {}]   ;;  %s1310_s8 = inlined_call_operand.vmem [shape: f32[1,32], index: 8, kind: input, shape index: {}]   ;;  %s1311_s9 = inlined_call_operand.hbm [shape: f32[2,8,32], index: 9, kind: output, shape index: {}]  }
   0x1   :  { %16 = vsyncpa [#allocation3 + $0x1], 0  ;;  %s1122_s30 = smov 0   ;;  %s1124_s10 = smov 0  }
   0x2   :  { %s1126_s11 = smov 0   ;;  %s1128_s12 = smov 0  }
   0x3 LB: > { %s1143_s13 = sadd.s32 4294967295, %s1067_s12   ;;  %s879_s14 = sadd.s32 4294967294, %s1067_s12   ;;  %s1067_s12 = sphi %s1128_s12, %s1317_s12   ;;  %s1063_s11 = sphi %s1126_s11, %s1316_s11   ;;  %s1059_s10 = sphi %s1124_s10, %s1315_s10   ;;  %s1055_s30 = sphi %s1122_s30, %s1314_s30  }
   0x4   : > { %s1147_s15 = sadd.s32 1, %s1067_s12   ;;  %s233_s16 = sadd.s32 1, %s1063_s11 }
   0x5   : > { %s230_s17 = ssub.s32 %s1067_s12, %s1147_s15  ;;  %p243_p0 = scmp.ne.s32.totalorder %s1063_s11, %s1059_s10 }
   0x6   : > { %p231_p1 = scmp.eq.s32.totalorder %s230_s17, 0  ;;  %p244_p2 = scmp.eq.s32.totalorder %s1143_s13, 1 }
   0x7   : > { %p249_p3 = scmp.ne.s32.totalorder %s1059_s10, %s1055_s30  ;;  %p250_p4 = scmp.eq.s32.totalorder %s879_s14, 1 }
   0x8   : > { %s1158_s18 = scalar_select %p231_p1, %s1063_s11, %s233_s16  }
   0x9   : > { %p1160_p5 = por %p244_p2, %p243_p0  ;;  %p1164_p6 = por %p250_p4, %p249_p3 }
   0xa   : > { %p882_p7 = scmp.ge.s32.totalorder %s1067_s12, 1  ;;  %p307_p8 = scmp.lt.s32.totalorder %s1067_s12, 3 }
   0xc   : > { %p308_p9 = pnand %p882_p7, %p307_p8 }
   0xd   : > { %p350_p10 = scmp.lt.s32.totalorder (!%p308_p9), %s1143_s13, 1  ;;  %s897_s14 = sshll.u32 (!%p308_p9), %s1143_s13, 7 }
   0xe   : > { %311 = sbr.rel (%p308_p9) target bundleno = 785 (0x311), region = 56  ;;  %s1266_s23 = scalar_lea.hbm (!%p308_p9), %s1311_s9, %s897_s14 }
  0x13   : > { %v366_v0 = vld [vmem:[%s1305_s3 + $0x18] sm:$0xff]  ;;  %v1069_v2 = vmov 0.0   ;;  %v365_v3 = vld [vmem:[%s1305_s3 + $0x10] sm:$0xff]  ;;  %s351_s29 = scalar_select %p350_p10, %s1143_s13, 1  ;;  %v364_v5 = vld [vmem:[%s1305_s3 + $0x8] sm:$0xff]  ;;  %vm374_vm0 = vcmask 261120  }
  0x14   : > { %v453_v1 = vld [vmem:[%s1307_s5 + $0x18] sm:$0xff]  ;;  %919 = vmatprep.subr.mxu0 %v1069_v2  ;;  %930 = vmatprep.subr.mxu1 %v1069_v2  ;;  %v452_v4 = vld [vmem:[%s1307_s5 + $0x10] sm:$0xff]  ;;  %v451_v6 = vld [vmem:[%s1307_s5 + $0x8] sm:$0xff]  ;;  %vm1070_vm1 = vmmov 0   ;;  %vm619_vm2 = vcmask 130048   ;;  %vm696_vm3 = vcmask 64512  }
  0x15   : > { %920 = vmatpush3.msra.mxu0 %v366_v0  ;;  %931 = vmatpush3.msra.mxu1 %v453_v1  ;;  %s1194_s22 = sshll.u32 %s351_s29, 3  ;;  %v363_v7 = vld [vmem:[%s1305_s3] sm:$0xff]  ;;  %v538_v11 = vld [vmem:[%s1309_s7 + $0x18] sm:$0xff]  ;;  %v537_v12 = vld [vmem:[%s1309_s7 + $0x10] sm:$0xff]  ;;  %s1071_s13 = smov [#allocation2]  }
  0x16   : > { %921 = vmatprep.subr.mxu0 %v1069_v2  ;;  %932 = vmatprep.subr.mxu1 %v1069_v2  ;;  %s353_s27 = scalar_lea.vmem %s1302_s0, %s1194_s22  ;;  %s357_s16 = scalar_lea.vmem %s1303_s1, %s1194_s22  ;;  %v450_v8 = vld [vmem:[%s1307_s5] sm:$0xff]  ;;  %v536_v13 = vld [vmem:[%s1309_s7 + $0x8] sm:$0xff] }
  0x17   : > { %922 = vmatpush3.msra.mxu0 %v365_v3  ;;  %933 = vmatpush3.msra.mxu1 %v452_v4  ;;  %v362_v9 = vld [vmem:[%s353_s27] sm:$0xff]  ;;  %s347_s27 = sand.u32 1, %s1059_s10   ;;  %s1011_s25 = sshll.u32 %s1071_s13, 4  ;;  %s1012_s25 = int_to_ptr.vmem [resolvable:$false] %s1011_s25 }
  0x18   : > { %923 = vmatprep.subr.mxu0 %v1069_v2  ;;  %934 = vmatprep.subr.mxu1 %v1069_v2  ;;  %v449_v10 = vld [vmem:[%s357_s16] sm:$0xff]  ;;  %s361_s16 = scalar_lea.vmem %s1304_s2, %s1194_s22  ;;  %s883_s28 = sshll.u32 %s347_s27, 3 }
  0x19   : > { %924 = vmatpush3.msra.mxu0 %v364_v5  ;;  %935 = vmatpush3.msra.mxu1 %v451_v6  ;;  %v535_v14 = vld [vmem:[%s1309_s7] sm:$0xff]  ;;  %s783_s24 = scalar_lea.sflag [#allocation3], %s347_s27  ;;  %s1013_s26 = scalar_lea.vmem %s1012_s25, 256 }
  0x1a   : > { %925 = vmatprep.subr.mxu0 %v1069_v2  ;;  %936 = vmatprep.subr.mxu1 %v1069_v2  ;;  %v534_v15 = vld [vmem:[%s361_s16] sm:$0xff]  ;;  %s349_s16 = scalar_lea.vmem [#allocation2], %s883_s28 }
  0x1b   : > { %926 = vmatpush3.msra.mxu0 %v363_v7  ;;  %927 = vmatprep.mubr.msk.f32.mxu0 %vm1070_vm1, %v1069_v2  ;;  %v887_v16 = vld [vmem:[%s1306_s4] ss:$0 sm:$0xff]  ;;  %s796_s29 = sshll.u32 %s349_s16, 4  ;;  %s797_s29 = int_to_ptr.vmem [resolvable:$true] %s796_s29 }
  0x1c   : > { %937 = vmatpush3.msra.mxu1 %v450_v8  ;;  %938 = vmatprep.mubr.msk.f32.mxu1 %vm1070_vm1, %v1069_v2  ;;  %v889_v17 = vld [vmem:[%s1308_s6] ss:$0 sm:$0xff]  ;;  %s1007_s22 = scalar_lea.vmem %s797_s29, 128  ;;  %p1014_p0 = scmp.lt.s32.totalorder %s797_s29, %s1012_s25 }
  0x1d   : > { %928 = vmatmul.mubr.msk.f32.vlgmr.msra.gmra.mxu0 %vm374_vm0, %v362_v9  ;;  %939 = vmatmul.mubr.msk.f32.vlgmr.msra.gmra.mxu1 %vm374_vm0, %v449_v10  ;;  %v891_v28 = vld [vmem:[%s1310_s8] ss:$0 sm:$0xff]  ;;  %p1008_p11 = scmp.ne.s32.totalorder %s797_s29, %s1007_s22  ;;  %p1015_p1 = scmp.lt.s32.totalorder %s1013_s26, %s1007_s22 }
  0x1e   : > { %952 = vmatprep.subr.mxu1 %v1069_v2  ;;  %954 = vmatprep.mubr.msk.f32.mxu1 %vm1070_vm1, %v1069_v2 }
  0x1f   : > { %941 = vmatprep.subr.mxu0 %v1069_v2  ;;  %949 = vmatprep.mubr.msk.f32.mxu0 %vm1070_vm1, %v1069_v2  ;;  %p1009_p12 = pnand %p1008_p11, %p1160_p5  ;;  %p1016_p2 = por %p1015_p1, %p1014_p0 }
  0x20   : > { %942 = vmatpush3.msra.mxu0 %v538_v11 }
  0x21   : > { %943 = vmatprep.subr.mxu0 %v1069_v2  ;;  %p1010_p13 = pneg %p1009_p12 }
  0x22   : > { %944 = vmatpush3.msra.mxu0 %v537_v12 }
  0x23   : > { %945 = vmatprep.subr.mxu0 %v1069_v2  ;;  %p1017_p3 = pnand %p1016_p2, %p1010_p13 }
  0x24   : > { %946 = vmatpush3.msra.mxu0 %v536_v13 }
  0x25   : > { %947 = vmatprep.subr.mxu0 %v1069_v2 }
  0x26   : > { %948 = vmatpush3.msra.mxu0 %v535_v14 }
  0x27   : > { %950 = vmatmul.mubr.msk.f32.vlgmr.msra.gmra.mxu0 %vm374_vm0, %v534_v15 }
  0xdd   : > { %v444_v18 = vpop.f32.mrf.mxu0  ;;  %v530_v19 = vpop.f32.mrf.mxu1 }
  0xde   : > { %v445_v20 = vadd.f32 %v887_v16, %v444_v18  ;;  %v531_v21 = vadd.f32 %v889_v17, %v530_v19 }
  0xdf   : > { %v929_v22 = vpop.f32.mrf.mxu0  ;;  %v940_v23 = vpop.f32.mrf.mxu1 }
  0xe0   : > { %v448_v24 = vmul.f32 0.25, %v445_v20  ;;  %953 = vmatpush3.xpose.msk.msra.mxu1 %vm619_vm2, %v531_v21 }
  0xe1   : > { %957 = vmatprep.subr.mxu1 %v1069_v2 }
  0xe3   : > { %955 = vmatmul.mubr.msk.f32.vlgmr.msra.gmra.mxu1 %vm619_vm2, %v448_v24 }
  0xe4   : > { %959 = vmatprep.mubr.msk.f32.mxu1 %vm1070_vm1, %v1069_v2 }
  0xe7   : > { %v615_v29 = vpop.f32.mrf.mxu0 }
  0xe8   : > { %v616_v30 = vadd.f32 %v891_v28, %v615_v29 }
  0xe9   : > { %v951_v31 = vpop.f32.mrf.mxu0 }
  0xea   : > { %958 = vmatpush3.msra.mxu1 %v616_v30 }
 0x1a3   : > { %v692_v25 = vpop.f32.mrf.mxu1 }
 0x1a4   : > { %v697_v26 = vsel %vm696_vm3, %v692_v25, -inf }
 0x1a5   : > { %698 = vmax.xlane.f32.xlu0 %v697_v26  ;;  %v956_v27 = vpop.f32.mrf.mxu1 }
 0x22e   : > { %v699_v32 = vpop.xlane.xlu0 %698 }
 0x22f   : > { %v700_v33 = vsub.f32 %v692_v25, %v699_v32 }
 0x231   : > { %v701_v34 = vmul.f32 1.442695, %v700_v33 }
 0x233   : > { %1003 = vpow2.f32 %v701_v34 }
 0x240   : > { %v1004_v35 = vpop.eup %1003 }
 0x241   : > { %960 = vmatmul.mubr.msk.f32.vlgmr.msra.gmra.mxu1 %vm696_vm3, %v1004_v35  ;;  %v703_v36 = vsel %vm696_vm3, %v1004_v35, 0.0 }
 0x242   : > { %704 = vadd.xlane.f32.xlu0 %v703_v36 }
 0x2cb   : > { %v705_v37 = vpop.xlane.xlu0 %704 }
 0x2cc   : > { %1005 = vrcp.f32 %v705_v37 }
 0x2d9   : > { %v1006_v38 = vpop.eup %1005 }
 0x301   : > { %v775_v39 = vpop.f32.mrf.mxu1 }
 0x302   : > { %v780_v40 = vmul.f32 %v1006_v38, %v775_v39 }
 0x303   : > { %v961_v41 = vpop.f32.mrf.mxu1 }
 0x304   : > { %781 = vst.msk [vmem:[%s349_s16] sm:$0xff] %vm374_vm0, %v780_v40 }
 0x305   : > { %1020 = shalt.err (!%p1017_p3)
}
 0x306   : > { %s1021_s28 = scalar_lea.hbm %s1266_s23, 128  ;;  %s1025_s16 = scalar_lea.hbm %s1311_s9, 256 }
 0x307   : > { %p1022_p4 = scmp.ne.s32.totalorder %s1266_s23, %s1021_s28  ;;  %p1026_p9 = scmp.lt.s32.totalorder %s1266_s23, %s1311_s9 }
 0x308   : > { %p1027_p10 = scmp.lt.s32.totalorder %s1025_s16, %s1021_s28 }
 0x309   : > { %p1023_p7 = pnand %p1022_p4, %p1160_p5 }
 0x30a   : > { %p1028_p11 = por %p1027_p10, %p1026_p9 }
 0x30b   : > { %p1024_p8 = pneg %p1023_p7 }
 0x30d   : > { %p1029_p12 = pnand %p1028_p11, %p1024_p8 }
 0x30f   : > { %1032 = shalt.err (!%p1029_p12)
}
 0x310   : > { %962 = dma.vmem_to_hbm [thread:$0]  (%p1160_p5), %s797_s29, 128, %s1266_s23, %s783_s24  }
 0x311 PF: > { %p968_p13 = scmp.ge.s32.totalorder %s1067_s12, 2  ;;  %s808_s22 = sand.u32 1, %s1055_s30  }
 0x312   : > { %s809_s13 = scalar_lea.sflag [#allocation3], %s808_s22 }
 0x313   : > { %p965_p0 = pnand %p968_p13, %p1164_p6 }
 0x315   : > { %p966_p1 = pneg %p965_p0 }
 0x317   : > { %1050 = dma.done.wait (%p966_p1), %s809_s13, 128  }
 0x318   : > { %1052 = vsyncadd (%p966_p1), %s809_s13, 4294967168  ;;  %p19_p2 = scmp.ge.s32.totalorder %s1147_s15, 4   ;;  %s1314_s30 = smov %s1059_s10 }
 0x319   : > { %s1315_s10 = smov %s1063_s11  ;;  %s1316_s11 = smov %s1158_s18 }
 0x31a   : > { %s1317_s12 = smov %s1147_s15  ;;  %21 = sbr.rel (!%p19_p2) target bundleno = 3 (0x3), region = 97 }
 0x31f   :  { %814 = vsyncpa [#allocation3], 1 }
 0x320   :  { %816 = vsyncpa [#allocation3 + $0x1], 1 }

</bundles_post_ra>
